<compile_context>
chip_gen: v7x
topology: tpu7x:2x2x1
jax: 0.10.0
libtpu: 0.0.40
codegen_flags: <defaults>
</compile_context>

<pallas_src>
import functools

import jax
import jax.numpy as jnp
from jax import lax
from jax.experimental import pallas as pl
from jax.experimental.pallas import tpu as pltpu

_LANE = 128


def _round_up(x, m):
    return (x + m - 1) // m * m


def _cdiv(a, b):
    return -(-a // b)


def _diff_loss_kernel(x1_ref, x2_ref, out_ref, g1_acc, g2_acc, *, inv_d1d2):
    """Accumulate per-K-tile Grams; normalize + reduce in the last-step epilogue."""
    k = pl.program_id(0)

    @pl.when(k == 0)
    def _():
        g1_acc[...] = jnp.zeros_like(g1_acc)
        g2_acc[...] = jnp.zeros_like(g2_acc)

    # (B, TILE_K) x (B, TILE_K), contracting the feature (lane) axis of both
    # operands -> (B, B). Original dtype goes straight to the MXU; accumulate f32.
    dn = (((1,), (1,)), ((), ()))
    x1 = x1_ref[...]
    x2 = x2_ref[...]
    g1_acc[...] += lax.dot_general(x1, x1, dn, preferred_element_type=jnp.float32)
    g2_acc[...] += lax.dot_general(x2, x2, dn, preferred_element_type=jnp.float32)

    @pl.when(k == pl.num_programs(0) - 1)
    def _():
        g1 = g1_acc[...]
        g2 = g2_acc[...]
        b = g1.shape[0]

        # diag(G)_i = ||x_i||^2, extracted with iota masks (no gathers).
        row_i = lax.broadcasted_iota(jnp.int32, (b, b), 0)
        col_i = lax.broadcasted_iota(jnp.int32, (b, b), 1)
        eye = row_i == col_i
        g1_d = jnp.where(eye, g1, 0.0)
        g2_d = jnp.where(eye, g2, 0.0)

        # Reciprocal scales on O(B) elements only; the (B, B) work below is
        # plain VPU multiplies.  Epsilon placement matches torch: 1/(||x||+1e-6).
        inv1_c = 1.0 / (jnp.sqrt(jnp.sum(g1_d, axis=1, keepdims=True)) + 1e-6)  # (B,1)
        inv1_r = 1.0 / (jnp.sqrt(jnp.sum(g1_d, axis=0, keepdims=True)) + 1e-6)  # (1,B)
        inv2_c = 1.0 / (jnp.sqrt(jnp.sum(g2_d, axis=1, keepdims=True)) + 1e-6)
        inv2_r = 1.0 / (jnp.sqrt(jnp.sum(g2_d, axis=0, keepdims=True)) + 1e-6)

        g1n = g1 * (inv1_c * inv1_r)   # == x1n @ x1n.T
        g2n = g2 * (inv2_c * inv2_r)   # == x2n @ x2n.T

        # sum((x1n x1n^T) * (x2n x2n^T)) / (D1*D2) == mean((x1n^T x2n)^2)
        out_ref[0, 0] = jnp.sum(g1n * g2n) * inv_d1d2


def _choose_tile_k(d_pad, b, itemsize):
    """Biggest K tile (multiple of 256) keeping pipelined input buffers <= ~8 MiB."""
    budget = 8 * 1024 * 1024                       # 2 inputs x 2 pipeline buffers
    max_tile = max(256, (budget // (4 * b * itemsize)) // 256 * 256)
    if max_tile >= d_pad:
        return d_pad                               # single resident tile
    nk = _cdiv(d_pad, max_tile)
    return _round_up(_cdiv(d_pad, nk), 256)        # balance tiles, minimal padding


def diff_loss(input1, input2, *, tile_k=None):
    """Pallas DiffLoss.forward: mean((x1n^T @ x2n)**2). Returns a scalar f32."""
    b = input1.shape[0]
    # Keep the original dtype: no wrapper-side f32 copy in HBM.
    x1 = input1.reshape(b, -1)
    x2 = input2.reshape(b, -1)
    d1, d2 = x1.shape[1], x2.shape[1]

    itemsize = max(x1.dtype.itemsize, x2.dtype.itemsize)
    d_pad = _round_up(max(d1, d2), _LANE)
    if tile_k is None:
        tile_k = _choose_tile_k(d_pad, b, itemsize)
    else:
        assert tile_k % _LANE == 0 and tile_k > 0, "tile_k must be a multiple of 128"
    d_pad = _round_up(d_pad, tile_k)
    nk = d_pad // tile_k

    # Zero-pad the feature axis (only when needed) so both operands share one
    # K grid; zero columns contribute nothing to the Grams or the row norms,
    # and the mean divisor stays the original d1*d2.
    if x1.shape[1] != d_pad:
        x1 = jnp.pad(x1, ((0, 0), (0, d_pad - x1.shape[1])))
    if x2.shape[1] != d_pad:
        x2 = jnp.pad(x2, ((0, 0), (0, d_pad - x2.shape[1])))

    kernel = functools.partial(_diff_loss_kernel, inv_d1d2=1.0 / float(d1 * d2))

    # Advisory hint so XLA schedules this small, DMA-bound kernel sensibly.
    cost = pl.CostEstimate(
        flops=4 * b * b * d_pad + 32 * b * b,
        transcendentals=4 * b,
        bytes_accessed=b * d_pad * (x1.dtype.itemsize + x2.dtype.itemsize) + 4,
    )

    out = pl.pallas_call(
        kernel,
        out_shape=jax.ShapeDtypeStruct((1, 1), jnp.float32),
        grid_spec=pltpu.PrefetchScalarGridSpec(
            num_scalar_prefetch=0,
            grid=(nk,),
            in_specs=[
                pl.BlockSpec((b, tile_k), lambda k: (0, k)),
                pl.BlockSpec((b, tile_k), lambda k: (0, k)),
            ],
            out_specs=pl.BlockSpec(memory_space=pltpu.MemorySpace.SMEM),
            scratch_shapes=[
                pltpu.VMEM((b, b), jnp.float32),
                pltpu.VMEM((b, b), jnp.float32),
            ],
        ),
        compiler_params=pltpu.CompilerParams(
            dimension_semantics=("arbitrary",),
        ),
        cost_estimate=cost,
    )(x1, x2)
    return out[0, 0]


def _diff_loss_ref(input1, input2):
    """Pure-JAX reference mirroring the PyTorch module exactly."""
    b = input1.shape[0]
    x1 = input1.reshape(b, -1)
    x2 = input2.reshape(b, -1)
    n1 = jnp.linalg.norm(x1, axis=1, keepdims=True)
    n2 = jnp.linalg.norm(x2, axis=1, keepdims=True)
    x1n = x1 / (n1 + 1e-6)
    x2n = x2 / (n2 + 1e-6)
    g = x1n.T @ x2n
    return jnp.mean(g ** 2)


if __name__ == "__main__":
    key = jax.random.PRNGKey(0)
    k1, k2, k3 = jax.random.split(key, 3)
    # Small NCHW-shaped activations, as the module would receive from a conv.
    input1 = jax.random.normal(k1, (2, 8, 16, 16), dtype=jnp.float32)  # D1 = 2048
    input2 = jax.random.normal(k2, (2, 8, 16, 16), dtype=jnp.float32)  # D2 = 2048

    ref = _diff_loss_ref(input1, input2)

    # Auto tile choice (single resident K tile at this size).
    loss = diff_loss(input1, input2)
    jax.block_until_ready(loss)
    assert jnp.allclose(loss, ref, rtol=5e-3, atol=1e-10), (loss, ref)

    # Force a multi-step K grid to exercise the pipelined Gram accumulators.
    loss_blocked = diff_loss(input1, input2, tile_k=512)
    jax.block_until_ready(loss_blocked)
    assert jnp.allclose(loss_blocked, ref, rtol=5e-3, atol=1e-10), (loss_blocked, ref)

    # Mismatched feature dims (exercises the zero-padding path; D2 = 1024).
    input3 = jax.random.normal(k3, (2, 4, 16, 16), dtype=jnp.float32)
    ref_mixed = _diff_loss_ref(input1, input3)
    loss_mixed = diff_loss(input1, input3, tile_k=512)
    jax.block_until_ready(loss_mixed)
    assert jnp.allclose(loss_mixed, ref_mixed, rtol=5e-3, atol=1e-10), (loss_mixed, ref_mixed)

    print("KERNEL_OK")
</pallas_src>

<mosaic_0001>
module attributes {stable_mosaic.version = 11 : i64} {
  func.func @_diff_loss_kernel(%arg0: i32, %arg1: memref<2x2048xf32, #tpu.memory_space<vmem>>, %arg2: memref<2x2048xf32, #tpu.memory_space<vmem>>, %arg3: memref<1x1xf32, #tpu.memory_space<smem>>, %arg4: memref<2x2xf32, #tpu.memory_space<vmem>>, %arg5: memref<2x2xf32, #tpu.memory_space<vmem>>) attributes {dimension_semantics = [#tpu.dimension_semantics<arbitrary>], iteration_bounds = array<i64: 1>, scalar_prefetch = 0 : i64, scratch_operands = 2 : i64, tpu.core_type = #tpu.core_type<tc>, window_params = [{transform_indices = @transform_0, window_bounds = array<i64: 2, 2048>}, {transform_indices = @transform_1, window_bounds = array<i64: 2, 2048>}, {transform_indices = @transform_2, window_bounds = array<i64: 1, 1>}]} {
    %c0_i32 = arith.constant 0 : i32
    %0 = arith.cmpi eq, %arg0, %c0_i32 : i32
    %1 = arith.extui %0 : i1 to i32
    %c0_i32_0 = arith.constant 0 : i32
    %2 = arith.cmpi ne, %1, %c0_i32_0 : i32
    scf.if %2 {
      %cst_15 = arith.constant 0.000000e+00 : f32
      %16 = vector.broadcast %cst_15 : f32 to vector<2x2xf32>
      %c0_16 = arith.constant 0 : index
      %c0_17 = arith.constant 0 : index
      %17 = vector.load %arg4[%c0_16, %c0_17] : memref<2x2xf32, #tpu.memory_space<vmem>>, vector<2x2xf32>
      tpu.vector_store %arg4[%c0_16, %c0_17], %16 {strides = array<i32>} : memref<2x2xf32, #tpu.memory_space<vmem>>, vector<2x2xf32>,
      %cst_18 = arith.constant 0.000000e+00 : f32
      %18 = vector.broadcast %cst_18 : f32 to vector<2x2xf32>
      %c0_19 = arith.constant 0 : index
      %c0_20 = arith.constant 0 : index
      %19 = vector.load %arg5[%c0_19, %c0_20] : memref<2x2xf32, #tpu.memory_space<vmem>>, vector<2x2xf32>
      tpu.vector_store %arg5[%c0_19, %c0_20], %18 {strides = array<i32>} : memref<2x2xf32, #tpu.memory_space<vmem>>, vector<2x2xf32>,
    } else {
    }
    %c0 = arith.constant 0 : index
    %c0_1 = arith.constant 0 : index
    %3 = vector.load %arg1[%c0, %c0_1] : memref<2x2048xf32, #tpu.memory_space<vmem>>, vector<2x2048xf32>
    %c0_2 = arith.constant 0 : index
    %c0_3 = arith.constant 0 : index
    %4 = vector.load %arg2[%c0_2, %c0_3] : memref<2x2048xf32, #tpu.memory_space<vmem>>, vector<2x2048xf32>
    %c0_4 = arith.constant 0 : index
    %c0_5 = arith.constant 0 : index
    %5 = vector.load %arg4[%c0_4, %c0_5] : memref<2x2xf32, #tpu.memory_space<vmem>>, vector<2x2xf32>
    %cst = arith.constant dense<0.000000e+00> : vector<2x2xf32>
    %6 = tpu.matmul %3, %3, %cst {dimension_numbers = #tpu.dot_dimension_numbers<[1], [1], [0], [0], [0, 0, 1, 0], [], []>} : vector<2x2048xf32>, vector<2x2048xf32>, vector<2x2xf32> -> vector<2x2xf32>
    %7 = arith.addf %5, %6 : vector<2x2xf32>
    %c0_6 = arith.constant 0 : index
    %c0_7 = arith.constant 0 : index
    %8 = vector.load %arg4[%c0_6, %c0_7] : memref<2x2xf32, #tpu.memory_space<vmem>>, vector<2x2xf32>
    tpu.vector_store %arg4[%c0_6, %c0_7], %7 {strides = array<i32>} : memref<2x2xf32, #tpu.memory_space<vmem>>, vector<2x2xf32>,
    %c0_8 = arith.constant 0 : index
    %c0_9 = arith.constant 0 : index
    %9 = vector.load %arg5[%c0_8, %c0_9] : memref<2x2xf32, #tpu.memory_space<vmem>>, vector<2x2xf32>
    %cst_10 = arith.constant dense<0.000000e+00> : vector<2x2xf32>
    %10 = tpu.matmul %4, %4, %cst_10 {dimension_numbers = #tpu.dot_dimension_numbers<[1], [1], [0], [0], [0, 0, 1, 0], [], []>} : vector<2x2048xf32>, vector<2x2048xf32>, vector<2x2xf32> -> vector<2x2xf32>
    %11 = arith.addf %9, %10 : vector<2x2xf32>
    %c0_11 = arith.constant 0 : index
    %c0_12 = arith.constant 0 : index
    %12 = vector.load %arg5[%c0_11, %c0_12] : memref<2x2xf32, #tpu.memory_space<vmem>>, vector<2x2xf32>
    tpu.vector_store %arg5[%c0_11, %c0_12], %11 {strides = array<i32>} : memref<2x2xf32, #tpu.memory_space<vmem>>, vector<2x2xf32>,
    %c0_i32_13 = arith.constant 0 : i32
    %13 = arith.cmpi eq, %arg0, %c0_i32_13 : i32
    %14 = arith.extui %13 : i1 to i32
    %c0_i32_14 = arith.constant 0 : i32
    %15 = arith.cmpi ne, %14, %c0_i32_14 : i32
    scf.if %15 {
      %c0_15 = arith.constant 0 : index
      %c0_16 = arith.constant 0 : index
      %16 = vector.load %arg4[%c0_15, %c0_16] : memref<2x2xf32, #tpu.memory_space<vmem>>, vector<2x2xf32>
      %c0_17 = arith.constant 0 : index
      %c0_18 = arith.constant 0 : index
      %17 = vector.load %arg5[%c0_17, %c0_18] : memref<2x2xf32, #tpu.memory_space<vmem>>, vector<2x2xf32>
      %18 = tpu.iota {dimensions = array<i32: 0>} : vector<2x2xi32>
      %19 = tpu.iota {dimensions = array<i32: 1>} : vector<2x2xi32>
      %20 = arith.cmpi eq, %18, %19 : vector<2x2xi32>
      %cst_19 = arith.constant 0.000000e+00 : f32
      %21 = vector.broadcast %cst_19 : f32 to vector<2x2xf32>
      %22 = arith.select %20, %16, %21 : vector<2x2xi1>, vector<2x2xf32>
      %cst_20 = arith.constant 0.000000e+00 : f32
      %23 = vector.broadcast %cst_20 : f32 to vector<2x2xf32>
      %24 = arith.select %20, %17, %23 : vector<2x2xi1>, vector<2x2xf32>
      %cst_21 = arith.constant dense<0.000000e+00> : vector<2xf32>
      %25 = vector.multi_reduction <add>, %22, %cst_21 [1] : vector<2x2xf32> to vector<2xf32>
      %26 = vector.shape_cast %25 : vector<2xf32> to vector<2x1xf32>
      %27 = math.sqrt %26 : vector<2x1xf32>
      %cst_22 = arith.constant 9.99999997E-7 : f32
      %28 = vector.broadcast %cst_22 : f32 to vector<2x1xf32>
      %29 = arith.addf %27, %28 : vector<2x1xf32>
      %cst_23 = arith.constant 1.000000e+00 : f32
      %30 = vector.broadcast %cst_23 : f32 to vector<2x1xf32>
      %31 = arith.divf %30, %29 : vector<2x1xf32>
      %cst_24 = arith.constant dense<0.000000e+00> : vector<2xf32>
      %32 = vector.multi_reduction <add>, %22, %cst_24 [0] : vector<2x2xf32> to vector<2xf32>
      %33 = vector.shape_cast %32 : vector<2xf32> to vector<1x2xf32>
      %34 = math.sqrt %33 : vector<1x2xf32>
      %cst_25 = arith.constant 9.99999997E-7 : f32
      %35 = vector.broadcast %cst_25 : f32 to vector<1x2xf32>
      %36 = arith.addf %34, %35 : vector<1x2xf32>
      %cst_26 = arith.constant 1.000000e+00 : f32
      %37 = vector.broadcast %cst_26 : f32 to vector<1x2xf32>
      %38 = arith.divf %37, %36 : vector<1x2xf32>
      %cst_27 = arith.constant dense<0.000000e+00> : vector<2xf32>
      %39 = vector.multi_reduction <add>, %24, %cst_27 [1] : vector<2x2xf32> to vector<2xf32>
      %40 = vector.shape_cast %39 : vector<2xf32> to vector<2x1xf32>
      %41 = math.sqrt %40 : vector<2x1xf32>
      %cst_28 = arith.constant 9.99999997E-7 : f32
      %42 = vector.broadcast %cst_28 : f32 to vector<2x1xf32>
      %43 = arith.addf %41, %42 : vector<2x1xf32>
      %cst_29 = arith.constant 1.000000e+00 : f32
      %44 = vector.broadcast %cst_29 : f32 to vector<2x1xf32>
      %45 = arith.divf %44, %43 : vector<2x1xf32>
      %cst_30 = arith.constant dense<0.000000e+00> : vector<2xf32>
      %46 = vector.multi_reduction <add>, %24, %cst_30 [0] : vector<2x2xf32> to vector<2xf32>
      %47 = vector.shape_cast %46 : vector<2xf32> to vector<1x2xf32>
      %48 = math.sqrt %47 : vector<1x2xf32>
      %cst_31 = arith.constant 9.99999997E-7 : f32
      %49 = vector.broadcast %cst_31 : f32 to vector<1x2xf32>
      %50 = arith.addf %48, %49 : vector<1x2xf32>
      %cst_32 = arith.constant 1.000000e+00 : f32
      %51 = vector.broadcast %cst_32 : f32 to vector<1x2xf32>
      %52 = arith.divf %51, %50 : vector<1x2xf32>
      %53 = vector.broadcast %31 : vector<2x1xf32> to vector<2x2xf32>
      %54 = vector.broadcast %38 : vector<1x2xf32> to vector<2x2xf32>
      %55 = arith.mulf %53, %54 : vector<2x2xf32>
      %56 = arith.mulf %16, %55 : vector<2x2xf32>
      %57 = vector.broadcast %45 : vector<2x1xf32> to vector<2x2xf32>
      %58 = vector.broadcast %52 : vector<1x2xf32> to vector<2x2xf32>
      %59 = arith.mulf %57, %58 : vector<2x2xf32>
      %60 = arith.mulf %17, %59 : vector<2x2xf32>
      %61 = arith.mulf %56, %60 : vector<2x2xf32>
      %62 = vector.shape_cast %61 : vector<2x2xf32> to vector<1x2x2xf32>
      %cst_33 = arith.constant dense<0.000000e+00> : vector<1xf32>
      %63 = vector.multi_reduction <add>, %62, %cst_33 [1, 2] : vector<1x2x2xf32> to vector<1xf32>
      %64 = vector.shape_cast %63 : vector<1xf32> to vector<1x1x1xf32>
      %65 = vector.extract %64[0, 0, 0] : f32 from vector<1x1x1xf32>
      %cst_34 = arith.constant 2.38418579E-7 : f32
      %66 = arith.mulf %65, %cst_34 : f32
      %c0_35 = arith.constant 0 : index
      %c0_36 = arith.constant 0 : index
      %67 = memref.load %arg3[%c0_35, %c0_36] : memref<1x1xf32, #tpu.memory_space<smem>>
      memref.store %66, %arg3[%c0_35, %c0_36] : memref<1x1xf32, #tpu.memory_space<smem>>
    } else {
    }
    return
  }
  func.func @transform_0(%arg0: i32) -> (i32, i32) {
    %c0_i32 = arith.constant 0 : i32
    %c0_i32_0 = arith.constant 0 : i32
    return %c0_i32, %arg0 : i32, i32
  }
  func.func @transform_1(%arg0: i32) -> (i32, i32) {
    %c0_i32 = arith.constant 0 : i32
    %c0_i32_0 = arith.constant 0 : i32
    return %c0_i32, %arg0 : i32, i32
  }
  func.func @transform_2(%arg0: i32) -> (i32, i32) {
    %c0_i32 = arith.constant 0 : i32
    %c0_i32_0 = arith.constant 0 : i32
    %c0_i32_1 = arith.constant 0 : i32
    return %c0_i32, %c0_i32_0 : i32, i32
  }
}

</mosaic_0001>

<bundles_post_ra>
// kernel: tpu_custom_call.1
= control target key start
LH: loop header
LB: loop body
LE: loop exit
PB: predicated region body
PF: predicated region fallthrough
CT: control target
= control target key end

     0   :  { %7 = vsyncpa [#allocation5], 0  ;;  %s1647_s0 = inlined_call_operand.hbm [shape: f32[2,2048], index: 0, kind: input, shape index: {}]   ;;  %s1648_s1 = inlined_call_operand.hbm [shape: f32[2,2048], index: 1, kind: input, shape index: {}]   ;;  %s1649_s2 = inlined_call_operand.hbm [shape: f32[1,1], index: 2, kind: output, shape index: {}]  }
   0x1   :  { %8 = vsyncpa [#allocation8], 0 }
   0x2   :  { %9 = vsyncpa [#allocation6], 0  ;;  %s1548_s9 = smov [#allocation4]   ;;  %s1549_s11 = smov [#allocation7]  }
   0x3   :  { %s16_s10 = sshll.u32 %s1548_s9, 4  ;;  %s26_s12 = sshll.u32 %s1549_s11, 4  ;;  %s17_s10 = int_to_ptr.vmem [resolvable:$true] %s16_s10  ;;  %s27_s12 = int_to_ptr.vmem [resolvable:$true] %s26_s12 }
   0x4   :  { %s1488_s15 = scalar_lea.hbm %s1647_s0, 512 }
   0x5   :  { %p1489_p0 = scmp.ne.s32.totalorder %s1647_s0, %s1488_s15  ;;  %p1492_p1 = scmp.lt.u32.totalorder %s1488_s15, %s1647_s0 }
   0x7   :  { %p1494_p2 = pnand %p1492_p1, %p1489_p0 }
   0x9   :  { %1497 = shalt.err (!%p1494_p2)
}
   0xa   :  { %s1498_s20 = scalar_lea.vmem %s17_s10, 512  ;;  %p1503_p4 = scmp.lt.s32.totalorder %s17_s10, %s17_s10 }
   0xb   :  { %p1499_p3 = scmp.ne.s32.totalorder %s17_s10, %s1498_s20  ;;  %p1504_p5 = scmp.lt.s32.totalorder %s1498_s20, %s1498_s20 }
   0xd   :  { %p1505_p6 = por %p1504_p5, %p1503_p4 }
   0xf   :  { %p1506_p7 = pnand %p1505_p6, %p1499_p3 }
  0x11   :  { %1509 = shalt.err (!%p1506_p7)
}
  0x12   :  { %19 = dma.hbm_to_vmem [thread:$0]  %s1647_s0, 512, %s17_s10, [#allocation5]  }
  0x13   :  { %s1510_s25 = scalar_lea.hbm %s1648_s1, 512 }
  0x14   :  { %p1511_p8 = scmp.ne.s32.totalorder %s1648_s1, %s1510_s25  ;;  %p1514_p9 = scmp.lt.u32.totalorder %s1510_s25, %s1648_s1 }
  0x16   :  { %p1516_p10 = pnand %p1514_p9, %p1511_p8 }
  0x18   :  { %1519 = shalt.err (!%p1516_p10)
}
  0x19   :  { %s1520_s30 = scalar_lea.vmem %s27_s12, 512  ;;  %p1525_p12 = scmp.lt.s32.totalorder %s27_s12, %s27_s12 }
  0x1a   :  { %p1521_p11 = scmp.ne.s32.totalorder %s27_s12, %s1520_s30  ;;  %p1526_p13 = scmp.lt.s32.totalorder %s1520_s30, %s1520_s30 }
  0x1c   :  { %p1527_p0 = por %p1526_p13, %p1525_p12 }
  0x1e   :  { %p1528_p1 = pnand %p1527_p0, %p1521_p11 }
  0x20   :  { %1531 = shalt.err (!%p1528_p1)
}
  0x21   :  { %29 = dma.hbm_to_vmem [thread:$0]  %s1648_s1, 512, %s27_s12, [#allocation8]  }
  0x22   :  { %1542 = dma.done.wait [#allocation5], 512  }
  0x23   :  { %1543 = vsyncadd [#allocation5], 4294966784 }
  0x24   :  { %1544 = dma.done.wait [#allocation8], 512  }
  0x25   :  { %1545 = vsyncadd [#allocation8], 4294966784  ;;  %v60_v0 = vlaneseq  ;;  %v1550_v1 = vmov 1983009808   ;;  %v43_v6 = vld [vmem:[#allocation4] sm:$0xff]  ;;  %v44_v7 = vld [vmem:[#allocation4 + $0x8] sm:$0xff] }
  0x26   :  { %v58_v2 = vunpack.c.l.s4 %v1550_v1  ;;  %v45_v8 = vld [vmem:[#allocation4 + $0x10] sm:$0xff]  ;;  %v56_v10 = vcombine.high %v43_v6, %v43_v6  ;;  %v73_v12 = vcombine.high %v44_v7, %v44_v7  ;;  %v46_v13 = vld [vmem:[#allocation4 + $0x18] sm:$0xff]  ;;  %v47_v24 = vld [vmem:[#allocation7] sm:$0xff]  ;;  %vm40_vm0 = vcmask 9216   ;;  %s1532_s7 = scalar_lea.hbm %s1649_s2, 16 }
  0x27   :  { %v1593_v3 = vshrl.u32 %v60_v0, 7  ;;  %v90_v15 = vcombine.high %v45_v8, %v45_v8  ;;  %v107_v20 = vcombine.high %v46_v13, %v46_v13  ;;  %v708_v29 = vcombine.high %v47_v24, %v47_v24  ;;  %v48_v30 = vld [vmem:[#allocation7 + $0x8] sm:$0xff]  ;;  %v49_v36 = vld [vmem:[#allocation7 + $0x10] sm:$0xff]  ;;  %v50_v42 = vld [vmem:[#allocation7 + $0x18] sm:$0xff]  ;;  %p1533_p2 = scmp.ne.s32.totalorder %s1649_s2, %s1532_s7  ;;  %p1536_p3 = scmp.lt.u32.totalorder %s1532_s7, %s1649_s2 }
  0x28   :  { %v59_v4 = vunpack.c.0.s8 %v58_v2  ;;  %v725_v35 = vcombine.high %v48_v30, %v48_v30  ;;  %v742_v41 = vcombine.high %v49_v36, %v49_v36  ;;  %v759_v47 = vcombine.high %v50_v42, %v50_v42 }
  0x29   :  { %v1551_v54 = vmov 0.0   ;;  %p1538_p4 = pnand %p1536_p3, %p1533_p2 }
  0x2a   :  { %v1596_v5 = vsub.s32 %v59_v4, %v1593_v3  ;;  %41 = vst.msk [vmem:[#allocation2] sm:$0x3] %vm40_vm0, %v1551_v54  ;;  %42 = vst.msk [vmem:[#allocation3] sm:$0x3] %vm40_vm0, %v1551_v54 }
  0x2c   :  { %v63_v9 = vrot.slane %v43_v6, %v1596_v5  ;;  %v80_v11 = vrot.slane %v44_v7, %v1596_v5  ;;  %v97_v14 = vrot.slane %v45_v8, %v1596_v5  ;;  %v70_v17 = vrot.slane %v56_v10, %v1596_v5 }
  0x2d   :  { %v87_v19 = vrot.slane %v73_v12, %v1596_v5  ;;  %v104_v23 = vrot.slane %v90_v15, %v1596_v5  ;;  %v114_v26 = vrot.slane %v46_v13, %v1596_v5  ;;  %v121_v28 = vrot.slane %v107_v20, %v1596_v5 }
  0x2e   :  { %v71_v16 = vcombine.high %v63_v9, %v63_v9  ;;  %v88_v18 = vcombine.high %v80_v11, %v80_v11  ;;  %v72_v21 = vcombine.high %v70_v17, %v70_v17  ;;  %v105_v25 = vcombine.high %v97_v14, %v97_v14 }
  0x2f   :  { %v89_v22 = vcombine.high %v87_v19, %v87_v19  ;;  %v106_v27 = vcombine.high %v104_v23, %v104_v23  ;;  %v122_v31 = vcombine.high %v114_v26, %v114_v26  ;;  %v715_v32 = vrot.slane %v47_v24, %v1596_v5 }
  0x30   :  { %140 = vmatprep.subr.mxu0 %v71_v16  ;;  %204 = vmatprep.mubr.f32.mxu0 %v71_v16  ;;  %v123_v33 = vcombine.high %v121_v28, %v121_v28  ;;  %v722_v34 = vrot.slane %v708_v29, %v1596_v5  ;;  %v732_v38 = vrot.slane %v48_v30, %v1596_v5  ;;  %v1362_v24 = vand.u32 127, %v60_v0 }
  0x31   :  { %141 = vmatpush1.xpose.msra.mxu0 %v63_v9  ;;  %210 = vmatprep.subr.mxu1 %v72_v21  ;;  %v723_v37 = vcombine.high %v715_v32, %v715_v32  ;;  %v739_v40 = vrot.slane %v725_v35, %v1596_v5  ;;  %v749_v44 = vrot.slane %v49_v36, %v1596_v5  ;;  %v51_v13 = vld [vmem:[#allocation2] sm:$0x3] }
  0x32   :  { %280 = vmatprep.subr.mxu0 %v88_v18  ;;  %211 = vmatpush1.xpose.msra.mxu1 %v70_v17  ;;  %v724_v39 = vcombine.high %v722_v34, %v722_v34  ;;  %v740_v43 = vcombine.high %v732_v38, %v732_v38  ;;  %v756_v46 = vrot.slane %v742_v41, %v1596_v5  ;;  %v703_v41 = vld [vmem:[#allocation3] sm:$0x3] }
  0x33   :  { %274 = vmatprep.mubr.f32.mxu1 %v72_v21  ;;  %350 = vmatprep.subr.mxu1 %v89_v22  ;;  %v741_v45 = vcombine.high %v739_v40, %v739_v40  ;;  %v757_v48 = vcombine.high %v749_v44, %v749_v44  ;;  %v766_v49 = vrot.slane %v50_v42, %v1596_v5 }
  0x34   :  { %205 = vmatmul.mubr.f32.vlgmr.msra.gmra.mrb[0].mxu0 %v63_v9  ;;  %v758_v50 = vcombine.high %v756_v46, %v756_v46  ;;  %v773_v51 = vrot.slane %v759_v47, %v1596_v5  ;;  %vm1363_vm1 = vcmp.eq.s32.totalorder %v1593_v3, %v1362_v24 }
  0x35   :  { %281 = vmatpush1.xpose.msra.mxu0 %v80_v11  ;;  %344 = vmatprep.mubr.f32.mxu0 %v88_v18  ;;  %v774_v52 = vcombine.high %v766_v49, %v766_v49 }
  0x36   :  { %275 = vmatmul.mubr.f32.vlgmr.msra.gmra.mrb[0].mxu1 %v70_v17  ;;  %420 = vmatprep.subr.mxu0 %v105_v25  ;;  %v775_v53 = vcombine.high %v773_v51, %v773_v51 }
  0x37   :  { %351 = vmatpush1.xpose.msra.mxu1 %v87_v19  ;;  %414 = vmatprep.mubr.f32.mxu1 %v89_v22 }
  0x38   :  { %345 = vmatmul.mubr.f32.vlgmr.msra.gmra.mrb[2].mxu0 %v80_v11  ;;  %490 = vmatprep.subr.mxu1 %v106_v27 }
  0x39   :  { %421 = vmatpush1.xpose.msra.mxu0 %v97_v14  ;;  %484 = vmatprep.mubr.f32.mxu0 %v105_v25 }
  0x3a   :  { %415 = vmatmul.mubr.f32.vlgmr.msra.gmra.mrb[2].mxu1 %v87_v19  ;;  %560 = vmatprep.subr.mxu0 %v122_v31 }
  0x3b   :  { %491 = vmatpush1.xpose.msra.mxu1 %v104_v23  ;;  %554 = vmatprep.mubr.f32.mxu1 %v106_v27 }
  0x3c   :  { %485 = vmatmul.mubr.f32.vlgmr.msra.gmra.mrb[4].mxu0 %v97_v14  ;;  %630 = vmatprep.subr.mxu1 %v123_v33 }
  0x3d   :  { %561 = vmatpush1.xpose.msra.mxu0 %v114_v26  ;;  %624 = vmatprep.mubr.f32.mxu0 %v122_v31 }
  0x3e   :  { %555 = vmatmul.mubr.f32.vlgmr.msra.gmra.mrb[4].mxu1 %v104_v23  ;;  %792 = vmatprep.subr.mxu0 %v723_v37 }
  0x3f   :  { %631 = vmatpush1.xpose.msra.mxu1 %v121_v28  ;;  %694 = vmatprep.mubr.f32.mxu1 %v123_v33 }
  0x40   :  { %625 = vmatmul.mubr.f32.vlgmr.msra.gmra.mrb[6].mxu0 %v114_v26  ;;  %862 = vmatprep.subr.mxu1 %v724_v39 }
  0x41   :  { %793 = vmatpush1.xpose.msra.mxu0 %v715_v32  ;;  %856 = vmatprep.mubr.f32.mxu0 %v723_v37 }
  0x42   :  { %695 = vmatmul.mubr.f32.vlgmr.msra.gmra.mrb[6].mxu1 %v121_v28  ;;  %932 = vmatprep.subr.mxu0 %v740_v43 }
  0x43   :  { %863 = vmatpush1.xpose.msra.mxu1 %v722_v34  ;;  %926 = vmatprep.mubr.f32.mxu1 %v724_v39 }
  0x44   :  { %857 = vmatmul.mubr.f32.vlgmr.msra.gmra.mrb[8].mxu0 %v715_v32  ;;  %1002 = vmatprep.subr.mxu1 %v741_v45 }
  0x45   :  { %933 = vmatpush1.xpose.msra.mxu0 %v732_v38  ;;  %996 = vmatprep.mubr.f32.mxu0 %v740_v43 }
  0x46   :  { %927 = vmatmul.mubr.f32.vlgmr.msra.gmra.mrb[8].mxu1 %v722_v34  ;;  %1072 = vmatprep.subr.mxu0 %v757_v48 }
  0x47   :  { %1003 = vmatpush1.xpose.msra.mxu1 %v739_v40  ;;  %1066 = vmatprep.mubr.f32.mxu1 %v741_v45 }
  0x48   :  { %997 = vmatmul.mubr.f32.vlgmr.msra.gmra.mrb[10].mxu0 %v732_v38  ;;  %1142 = vmatprep.subr.mxu1 %v758_v50 }
  0x49   :  { %1073 = vmatpush1.xpose.msra.mxu0 %v749_v44  ;;  %1136 = vmatprep.mubr.f32.mxu0 %v757_v48 }
  0x4a   :  { %1067 = vmatmul.mubr.f32.vlgmr.msra.gmra.mrb[10].mxu1 %v739_v40  ;;  %1212 = vmatprep.subr.mxu0 %v774_v52 }
  0x4b   :  { %1143 = vmatpush1.xpose.msra.mxu1 %v756_v46  ;;  %1206 = vmatprep.mubr.f32.mxu1 %v758_v50 }
  0x4c   :  { %1137 = vmatmul.mubr.f32.vlgmr.msra.gmra.mrb[12].mxu0 %v749_v44  ;;  %1282 = vmatprep.subr.mxu1 %v775_v53 }
  0x4d   :  { %1213 = vmatpush1.xpose.msra.mxu0 %v766_v49  ;;  %1276 = vmatprep.mubr.f32.mxu0 %v774_v52 }
  0x4e   :  { %1207 = vmatmul.mubr.f32.vlgmr.msra.gmra.mrb[12].mxu1 %v756_v46 }
  0x4f   :  { %1283 = vmatpush1.xpose.msra.mxu1 %v773_v51  ;;  %1346 = vmatprep.mubr.f32.mxu1 %v775_v53 }
  0x50   :  { %1277 = vmatmul.mubr.f32.vlgmr.msra.gmra.mrb[14].mxu0 %v766_v49 }
  0x52   :  { %1347 = vmatmul.mubr.f32.vlgmr.msra.gmra.mrb[14].mxu1 %v773_v51 }
 0x107   :  { %v206_v55 = vpop.f32.mrb[0].mxu0 }
 0x108   :  { %v208_v56 = vpop.f32.mrb[1].mxu0 }
 0x109   :  { %v276_v57 = vpop.f32.mrb[0].mxu1 }
 0x10a   :  { %v277_v58 = vadd.f32 %v276_v57, %v206_v55  ;;  %v278_v59 = vpop.f32.mrb[1].mxu1 }
 0x10b   :  { %v346_v60 = vpop.f32.mrb[2].mxu0 }
 0x10c   :  { %v347_v61 = vadd.f32 %v346_v60, %v277_v58  ;;  %v348_v62 = vpop.f32.mrb[3].mxu0 }
 0x10d   :  { %v416_v63 = vpop.f32.mrb[2].mxu1 }
 0x10e   :  { %v417_v1 = vadd.f32 %v416_v63, %v347_v61  ;;  %v418_v2 = vpop.f32.mrb[3].mxu1 }
 0x10f   :  { %v486_v4 = vpop.f32.mrb[4].mxu0 }
 0x110   :  { %v487_v5 = vadd.f32 %v486_v4, %v417_v1  ;;  %v488_v6 = vpop.f32.mrb[5].mxu0 }
 0x111   :  { %v556_v7 = vpop.f32.mrb[4].mxu1 }
 0x112   :  { %v557_v8 = vadd.f32 %v556_v7, %v487_v5  ;;  %v558_v9 = vpop.f32.mrb[5].mxu1 }
 0x113   :  { %v626_v10 = vpop.f32.mrb[6].mxu0 }
 0x114   :  { %v627_v11 = vadd.f32 %v626_v10, %v557_v8  ;;  %v628_v12 = vpop.f32.mrb[7].mxu0 }
 0x115   :  { %v696_v14 = vpop.f32.mrb[6].mxu1 }
 0x116   :  { %v697_v15 = vadd.f32 %v696_v14, %v627_v11  ;;  %v698_v16 = vpop.f32.mrb[7].mxu1 }
 0x117   :  { %v858_v17 = vpop.f32.mrb[8].mxu0 }
 0x118   :  { %v700_v18 = vadd.f32 %v697_v15, %v51_v13  ;;  %v860_v19 = vpop.f32.mrb[9].mxu0 }
 0x119   :  { %v928_v20 = vpop.f32.mrb[8].mxu1 }
 0x11a   :  { %702 = vst.msk [vmem:[#allocation2] sm:$0x3] %vm40_vm0, %v700_v18  ;;  %v929_v21 = vadd.f32 %v928_v20, %v858_v17  ;;  %v930_v22 = vpop.f32.mrb[9].mxu1 }
 0x11b   :  { %v998_v23 = vpop.f32.mrb[10].mxu0 }
 0x11c   :  { %v999_v25 = vadd.f32 %v998_v23, %v929_v21  ;;  %v1000_v26 = vpop.f32.mrb[11].mxu0 }
 0x11d   :  { %v1068_v27 = vpop.f32.mrb[10].mxu1 }
 0x11e   :  { %v1069_v28 = vadd.f32 %v1068_v27, %v999_v25  ;;  %v1070_v29 = vpop.f32.mrb[11].mxu1 }
 0x11f   :  { %v1138_v30 = vpop.f32.mrb[12].mxu0 }
 0x120   :  { %v1139_v31 = vadd.f32 %v1138_v30, %v1069_v28  ;;  %v1140_v32 = vpop.f32.mrb[13].mxu0 }
 0x121   :  { %v1208_v33 = vpop.f32.mrb[12].mxu1  ;;  %v1619_v34 = vld [vmem:[#allocation2] sm:$0x3] }
 0x122   :  { %v1209_v35 = vadd.f32 %v1208_v33, %v1139_v31  ;;  %v1210_v36 = vpop.f32.mrb[13].mxu1  ;;  %v1364_v37 = vsel %vm1363_vm1, %v1619_v34, 0.0 }
 0x123   :  { %v1278_v0 = vpop.f32.mrb[14].mxu0  ;;  %v1366_v38 = vsel %vm40_vm0, %v1364_v37, 0.0 }
 0x124   :  { %v1279_v39 = vadd.f32 %v1278_v0, %v1209_v35  ;;  %v1280_v40 = vpop.f32.mrb[15].mxu0  ;;  %1367 = vadd.xlane.f32.xlu0 %v1366_v38  ;;  %v1379_v49 = vrot.slane %v1366_v38, 4 }
 0x125   :  { %v1348_v42 = vpop.f32.mrb[14].mxu1 }
 0x126   :  { %v1349_v43 = vadd.f32 %v1348_v42, %v1279_v39  ;;  %v1350_v44 = vpop.f32.mrb[15].mxu1  ;;  %v1380_v51 = vadd.f32 %v1379_v49, %v1366_v38 }
 0x128   :  { %v1352_v45 = vadd.f32 %v1349_v43, %v703_v41  ;;  %v1381_v53 = vrot.slane %v1380_v51, 2 }
 0x12a   :  { %1353 = vst.msk [vmem:[#allocation3] sm:$0x3] %vm40_vm0, %v1352_v45  ;;  %v1382_v55 = vadd.f32 %v1381_v53, %v1380_v51 }
 0x12c   :  { %v1383_v57 = vrot.slane %v1382_v55, 1 }
 0x12e   :  { %v1384_v60 = vadd.f32 %v1383_v57, %v1382_v55 }
 0x130   :  { %vm1387_vm3 = vcmp.eq.f32.partialorder %v1384_v60, inf  ;;  %v1390_v10 = vand.u32 2147483648, %v1384_v60  ;;  %vm1389_vm6 = vcmp.eq.f32.partialorder %v1384_v60, 0.0 }
 0x131   :  { %v1626_v46 = vld [vmem:[#allocation3] sm:$0x3] }
 0x132   :  { %v1365_v47 = vsel %vm1363_vm1, %v1626_v46, 0.0 }
 0x133   :  { %v1395_v48 = vsel %vm40_vm0, %v1365_v47, 0.0 }
 0x134   :  { %1396 = vadd.xlane.f32.xlu0 %v1395_v48  ;;  %v1408_v50 = vrot.slane %v1395_v48, 4 }
 0x136   :  { %v1409_v52 = vadd.f32 %v1408_v50, %v1395_v48 }
 0x138   :  { %v1410_v54 = vrot.slane %v1409_v52, 2 }
 0x13a   :  { %v1411_v56 = vadd.f32 %v1410_v54, %v1409_v52 }
 0x13c   :  { %v1412_v58 = vrot.slane %v1411_v56, 1 }
 0x13e   :  { %v1413_v61 = vadd.f32 %v1412_v58, %v1411_v56 }
 0x140   :  { %vm1416_vm5 = vcmp.eq.f32.partialorder %v1413_v61, inf  ;;  %v1419_v12 = vand.u32 2147483648, %v1413_v61  ;;  %vm1418_vm7 = vcmp.eq.f32.partialorder %v1413_v61, 0.0 }
 0x1b1   :  { %v1368_v59 = vpop.xlane.xlu0 %1367 }
 0x1b2   :  { %1472 = vrsqrt.f32 %v1368_v59  ;;  %vm1371_vm2 = vcmp.eq.f32.partialorder %v1368_v59, inf  ;;  %v1374_v7 = vand.u32 2147483648, %v1368_v59  ;;  %vm1373_vm4 = vcmp.eq.f32.partialorder %v1368_v59, 0.0 }
 0x1b3   :  { %1474 = vrsqrt.f32 %v1384_v60 }
 0x1b4   :  { %1476 = vrsqrt.f32 %v1413_v61 }
 0x1bc   :  { %v1473_v3 = vpop.eup %1472 }
 0x1bd   :  { %v1475_v62 = vpop.eup %1474  ;;  %v1370_v1 = vmul.f32 %v1473_v3, %v1368_v59 }
 0x1be   :  { %v1477_v63 = vpop.eup %1476  ;;  %v1386_v4 = vmul.f32 %v1475_v62, %v1384_v60 }
 0x1bf   :  { %v1415_v5 = vmul.f32 %v1477_v63, %v1413_v61  ;;  %v1372_v6 = vsel %vm1371_vm2, %v1368_v59, %v1370_v1 }
 0x1c0   :  { %v1388_v8 = vsel %vm1387_vm3, %v1384_v60, %v1386_v4  ;;  %v1375_v9 = vsel %vm1373_vm4, %v1374_v7, %v1372_v6 }
 0x1c1   :  { %v1397_v2 = vpop.xlane.xlu0 %1396  ;;  %v1417_v11 = vsel %vm1416_vm5, %v1413_v61, %v1415_v5  ;;  %v1391_v13 = vsel %vm1389_vm6, %v1390_v10, %v1388_v8  ;;  %v1376_v14 = vadd.f32 1e-06, %v1375_v9 }
 0x1c2   :  { %1478 = vrsqrt.f32 %v1397_v2  ;;  %v1420_v15 = vsel %vm1418_vm7, %v1419_v12, %v1417_v11  ;;  %v1392_v18 = vadd.f32 1e-06, %v1391_v13  ;;  %vm1400_vm8 = vcmp.eq.f32.partialorder %v1397_v2, inf }
 0x1c3   :  { %v1403_v19 = vand.u32 2147483648, %v1397_v2  ;;  %v1421_v20 = vadd.f32 1e-06, %v1420_v15  ;;  %1480 = vrcp.f32 %v1376_v14  ;;  %vm1402_vm9 = vcmp.eq.f32.partialorder %v1397_v2, 0.0 }
 0x1c4   :  { %1482 = vrcp.f32 %v1392_v18 }
 0x1c5   :  { %1484 = vrcp.f32 %v1421_v20 }
 0x1cc   :  { %v1479_v16 = vpop.eup %1478 }
 0x1cd   :  { %v1399_v17 = vmul.f32 %v1479_v16, %v1397_v2  ;;  %v1481_v24 = vpop.eup %1480 }
 0x1ce   :  { %v1483_v25 = vpop.eup %1482 }
 0x1cf   :  { %v1401_v21 = vsel %vm1400_vm8, %v1397_v2, %v1399_v17  ;;  %v1485_v26 = vpop.eup %1484  ;;  %v1424_v27 = vmul.f32 %v1483_v25, %v1481_v24 }
 0x1d0   :  { %v1404_v22 = vsel %vm1402_vm9, %v1403_v19, %v1401_v21 }
 0x1d1   :  { %v1405_v23 = vadd.f32 1e-06, %v1404_v22  ;;  %v1425_v30 = vmul.f32 %v1424_v27, %v1619_v34 }
 0x1d3   :  { %1486 = vrcp.f32 %v1405_v23 }
 0x1dd   :  { %v1487_v28 = vpop.eup %1486 }
 0x1de   :  { %v1426_v29 = vmul.f32 %v1487_v28, %v1485_v26 }
 0x1e0   :  { %v1427_v31 = vmul.f32 %v1426_v29, %v1626_v46 }
 0x1e2   :  { %v1428_v32 = vmul.f32 %v1427_v31, %v1425_v30 }
 0x1e4   :  { %v1429_v33 = vsel %vm40_vm0, %v1428_v32, 0.0 }
 0x1e5   :  { %1430 = vadd.xlane.f32.xlu1 %v1429_v33 }
 0x272   :  { %v1431_v35 = vpop.xlane.xlu1 %1430 }
 0x273   :  { %v1432_v36 = vrot.slane %v1431_v35, 4 }
 0x275   :  { %v1433_v37 = vadd.f32 %v1432_v36, %v1431_v35 }
 0x277   :  { %v1434_v0 = vrot.slane %v1433_v37, 2 }
 0x279   :  { %v1435_v38 = vadd.f32 %v1434_v0, %v1433_v37 }
 0x27b   :  { %v1436_v39 = vrot.slane %v1435_v38, 1 }
 0x27d   :  { %v1437_v40 = vadd.f32 %v1436_v39, %v1435_v38 }
 0x27f   :  { %1457 = vpush %v1437_v40 }
 0x2b0   :  { %s1458_s1 = spop %1457 }
 0x2b1   :  { %s1439_s4 = smul.f32 2.3841858e-07, %s1458_s1 }
 0x2b3   :  { %1441 = sst [smem:[#allocation9]] %s1439_s4 }
 0x2b4   :  { %1541 = shalt.err (!%p1538_p4)
}
 0x2b5   :  { %s1552_s12 = smov [#allocation9]  }
 0x2b6   :  { %1449 = dma.smem_to_hbm %s1552_s12, 16, %s1649_s2, [#allocation6]  }
 0x2b7   :  { %1546 = dma.done.wait [#allocation6], 16  }
 0x2b8   :  { %1547 = vsyncadd [#allocation6], 4294967280 }
 0x2b9   :  { %1453 = sfence }
 0x2ba   :  { %1454 = vsyncpa [#allocation5], 1 }
 0x2bb   :  { %1455 = vsyncpa [#allocation8], 1 }
 0x2bc   :  { %1456 = vsyncpa [#allocation6], 1 }

</bundles_post_ra>
